<compile_context>
chip_gen: v7x
topology: tpu7x:2x2x1
jax: 0.10.0
libtpu: 0.0.40
codegen_flags: <defaults>
</compile_context>

<pallas_src>
import functools

import jax
import jax.numpy as jnp
from jax.experimental import pallas as pl
from jax.experimental.pallas import tpu as pltpu


def _ewma_norm_kernel(inv_db_ref, x_ref, rm_ref, rmsq_ref,
                      y_ref, rm_out_ref, rmsq_out_ref,
                      *, beta: float):
    """One feature tile: x (B, TD), rm/rmsq (1, TD), inv_db (1, 1) in SMEM."""
    inv_db = inv_db_ref[0, 0]                                # scalar (SMEM)

    xf = x_ref[...].astype(jnp.float32)                      # (B, TD)
    inv_b = jnp.float32(1.0 / xf.shape[0])

    # Batch statistics: cross-sublane reduction (XLU) over axis 0.
    batch_mean = jnp.sum(xf, axis=0, keepdims=True) * inv_b          # (1, TD)
    batch_mean_sq = jnp.sum(xf * xf, axis=0, keepdims=True) * inv_b  # (1, TD)

    # EWMA update of running stats (row-wise).
    w = jnp.float32(beta)
    omw = jnp.float32(1.0 - beta)
    rm_new = rm_ref[...] * w + batch_mean * omw
    rmsq_new = rmsq_ref[...] * w + batch_mean_sq * omw

    # Debiased mean / variance; divides and rsqrt only on the (1, TD) row.
    mean = rm_new * inv_db
    mean_sq = rmsq_new * inv_db
    var = jnp.maximum(mean_sq - mean * mean, jnp.float32(0.01))
    inv_std = jax.lax.rsqrt(var)                             # (1, TD)

    # Normalize: broadcast (1, TD) over (B, TD); pure VALU sub/mul.
    y_ref[...] = ((xf - mean) * inv_std).astype(y_ref.dtype)
    rm_out_ref[...] = rm_new
    rmsq_out_ref[...] = rmsq_new


def _pick_tile_d(batch: int, d: int, max_tile: int = 2048,
                 vmem_budget_bytes: int = 8 * 1024 * 1024) -> int:
    """Largest lane-dense (multiple-of-128) feature tile within a VMEM budget.

    Double-buffered x and y tiles dominate VMEM use: per lane column we hold
    2 buffers * (x row + y row) * batch * 4B plus a few (1, TD) stat rows.
    """
    per_lane_bytes = 2 * (2 * batch + 6) * 4
    td = (vmem_budget_bytes // per_lane_bytes) // 128 * 128
    td = max(128, min(td, max_tile))
    return d if d <= td else td


@functools.partial(jax.jit, static_argnames=("beta", "epsilon", "tile_d"))
def normalize_ewma_train(x, running_mean, running_mean_sq, debiasing_term,
                         *, beta=0.99, epsilon=0.01, tile_d=None):
    """Returns (y, new_running_mean, new_running_mean_sq, new_debiasing_term)."""
    B, D = x.shape
    rm = running_mean.reshape(1, D).astype(jnp.float32)
    rmsq = running_mean_sq.reshape(1, D).astype(jnp.float32)
    db = jnp.asarray(debiasing_term, jnp.float32)

    # Debiasing term is x-independent: keep its EWMA update on the scalar path.
    db_new = db * beta + (1.0 - beta)
    inv_db = (1.0 / jnp.maximum(db_new, jnp.float32(epsilon))).reshape(1, 1)

    # Feature-axis tiling: lane-dense (multiple of 128) tiles, or the full
    # extent if D is small.  Partial last blocks are handled by Pallas.
    td = _pick_tile_d(B, D) if tile_d is None else (D if D <= tile_d else tile_d)
    grid = (pl.cdiv(D, td),)

    kernel = functools.partial(_ewma_norm_kernel, beta=beta)
    y, rm_new, rmsq_new = pl.pallas_call(
        kernel,
        grid=grid,
        in_specs=[
            pl.BlockSpec(memory_space=pltpu.MemorySpace.SMEM),   # inv_db (1,1)
            pl.BlockSpec((B, td), lambda d: (0, d)),             # x
            pl.BlockSpec((1, td), lambda d: (0, d)),             # running_mean
            pl.BlockSpec((1, td), lambda d: (0, d)),             # running_mean_sq
        ],
        out_specs=(
            pl.BlockSpec((B, td), lambda d: (0, d)),             # y
            pl.BlockSpec((1, td), lambda d: (0, d)),             # new running_mean
            pl.BlockSpec((1, td), lambda d: (0, d)),             # new running_mean_sq
        ),
        out_shape=(
            jax.ShapeDtypeStruct((B, D), x.dtype),
            jax.ShapeDtypeStruct((1, D), jnp.float32),
            jax.ShapeDtypeStruct((1, D), jnp.float32),
        ),
        compiler_params=pltpu.CompilerParams(
            dimension_semantics=("parallel",)),
    )(inv_db, x, rm, rmsq)
    return y, rm_new.reshape(D), rmsq_new.reshape(D), db_new.reshape(())


def _reference(x, rm, rmsq, db, beta=0.99, epsilon=0.01):
    """Pure-JAX reference mirroring the PyTorch module (training mode)."""
    bm = jnp.mean(x, axis=0)
    bmsq = jnp.mean(x * x, axis=0)
    rm_n = rm * beta + bm * (1.0 - beta)
    rmsq_n = rmsq * beta + bmsq * (1.0 - beta)
    db_n = db * beta + (1.0 - beta)
    d = jnp.maximum(db_n, epsilon)
    mean = rm_n / d
    var = jnp.maximum(rmsq_n / d - mean ** 2, 0.01)
    y = (x - mean[None, :]) / jnp.sqrt(var)[None, :]
    return y, rm_n, rmsq_n, db_n


if __name__ == "__main__":
    key = jax.random.PRNGKey(0)
    batch, insize = 8, 1024                # x: (batch, insize); norm_axes=1

    x = jax.random.normal(key, (batch, insize), dtype=jnp.float32) * 2.0 + 1.0

    # Deterministic parameter init, matching NormalizeEwma.__init__.
    running_mean = jnp.zeros((insize,), jnp.float32)
    running_mean_sq = jnp.zeros((insize,), jnp.float32)
    debiasing_term = jnp.float32(0.0)

    # Force a multi-tile grid (tile_d=512 -> 2 feature tiles) to exercise the
    # tiled path at small shapes; the adaptive default would use one tile here.
    y, rm_new, rmsq_new, db_new = normalize_ewma_train(
        x, running_mean, running_mean_sq, debiasing_term, tile_d=512)
    jax.block_until_ready((y, rm_new, rmsq_new, db_new))

    y_ref, rm_ref, rmsq_ref, db_ref = _reference(
        x, running_mean, running_mean_sq, debiasing_term)
    assert jnp.allclose(y, y_ref, atol=1e-5, rtol=1e-5), \
        float(jnp.max(jnp.abs(y - y_ref)))
    assert jnp.allclose(rm_new, rm_ref, atol=1e-6)
    assert jnp.allclose(rmsq_new, rmsq_ref, atol=1e-6)
    assert jnp.allclose(db_new, db_ref, atol=1e-6)

    # Second step with non-zero running stats / debiasing term (typical state
    # after warm-up), using the adaptive tile size.
    y2, rm2, rmsq2, db2 = normalize_ewma_train(
        x * 0.5 - 1.0, rm_new, rmsq_new, db_new)
    jax.block_until_ready((y2, rm2, rmsq2, db2))
    y2_ref, rm2_ref, rmsq2_ref, db2_ref = _reference(
        x * 0.5 - 1.0, rm_ref, rmsq_ref, db_ref)
    assert jnp.allclose(y2, y2_ref, atol=1e-5, rtol=1e-5)
    assert jnp.allclose(rm2, rm2_ref, atol=1e-6)
    assert jnp.allclose(rmsq2, rmsq2_ref, atol=1e-6)
    assert jnp.allclose(db2, db2_ref, atol=1e-6)

    print("KERNEL_OK")
</pallas_src>

<mosaic_0001>
module attributes {stable_mosaic.version = 11 : i64} {
  func.func @_ewma_norm_kernel(%arg0: i32, %arg1: memref<1x1xf32, #tpu.memory_space<smem>>, %arg2: memref<8x512xf32, #tpu.memory_space<vmem>>, %arg3: memref<1x512xf32, #tpu.memory_space<vmem>>, %arg4: memref<1x512xf32, #tpu.memory_space<vmem>>, %arg5: memref<8x512xf32, #tpu.memory_space<vmem>>, %arg6: memref<1x512xf32, #tpu.memory_space<vmem>>, %arg7: memref<1x512xf32, #tpu.memory_space<vmem>>) attributes {dimension_semantics = [#tpu.dimension_semantics<parallel>], iteration_bounds = array<i64: 2>, scalar_prefetch = 0 : i64, scratch_operands = 0 : i64, tpu.core_type = #tpu.core_type<tc>, window_params = [{transform_indices = @transform_0, window_bounds = array<i64: 1, 1>}, {transform_indices = @transform_1, window_bounds = array<i64: 8, 512>}, {transform_indices = @transform_2, window_bounds = array<i64: 1, 512>}, {transform_indices = @transform_3, window_bounds = array<i64: 1, 512>}, {transform_indices = @transform_4, window_bounds = array<i64: 8, 512>}, {transform_indices = @transform_5, window_bounds = array<i64: 1, 512>}, {transform_indices = @transform_6, window_bounds = array<i64: 1, 512>}]} {
    %c0 = arith.constant 0 : index
    %c0_0 = arith.constant 0 : index
    %0 = memref.load %arg1[%c0, %c0_0] : memref<1x1xf32, #tpu.memory_space<smem>>
    %c0_1 = arith.constant 0 : index
    %c0_2 = arith.constant 0 : index
    %1 = vector.load %arg2[%c0_1, %c0_2] : memref<8x512xf32, #tpu.memory_space<vmem>>, vector<8x512xf32>
    %cst = arith.constant dense<0.000000e+00> : vector<512xf32>
    %2 = vector.multi_reduction <add>, %1, %cst [0] : vector<8x512xf32> to vector<512xf32>
    %3 = vector.shape_cast %2 : vector<512xf32> to vector<1x512xf32>
    %cst_3 = arith.constant 1.250000e-01 : f32
    %4 = vector.broadcast %cst_3 : f32 to vector<1x512xf32>
    %5 = arith.mulf %3, %4 : vector<1x512xf32>
    %6 = arith.mulf %1, %1 : vector<8x512xf32>
    %cst_4 = arith.constant dense<0.000000e+00> : vector<512xf32>
    %7 = vector.multi_reduction <add>, %6, %cst_4 [0] : vector<8x512xf32> to vector<512xf32>
    %8 = vector.shape_cast %7 : vector<512xf32> to vector<1x512xf32>
    %cst_5 = arith.constant 1.250000e-01 : f32
    %9 = vector.broadcast %cst_5 : f32 to vector<1x512xf32>
    %10 = arith.mulf %8, %9 : vector<1x512xf32>
    %c0_6 = arith.constant 0 : index
    %c0_7 = arith.constant 0 : index
    %11 = vector.load %arg3[%c0_6, %c0_7] : memref<1x512xf32, #tpu.memory_space<vmem>>, vector<1x512xf32>
    %cst_8 = arith.constant 9.900000e-01 : f32
    %12 = vector.broadcast %cst_8 : f32 to vector<1x512xf32>
    %13 = arith.mulf %11, %12 : vector<1x512xf32>
    %cst_9 = arith.constant 0.00999999977 : f32
    %14 = vector.broadcast %cst_9 : f32 to vector<1x512xf32>
    %15 = arith.mulf %5, %14 : vector<1x512xf32>
    %16 = arith.addf %13, %15 : vector<1x512xf32>
    %c0_10 = arith.constant 0 : index
    %c0_11 = arith.constant 0 : index
    %17 = vector.load %arg4[%c0_10, %c0_11] : memref<1x512xf32, #tpu.memory_space<vmem>>, vector<1x512xf32>
    %cst_12 = arith.constant 9.900000e-01 : f32
    %18 = vector.broadcast %cst_12 : f32 to vector<1x512xf32>
    %19 = arith.mulf %17, %18 : vector<1x512xf32>
    %cst_13 = arith.constant 0.00999999977 : f32
    %20 = vector.broadcast %cst_13 : f32 to vector<1x512xf32>
    %21 = arith.mulf %10, %20 : vector<1x512xf32>
    %22 = arith.addf %19, %21 : vector<1x512xf32>
    %23 = vector.broadcast %0 : f32 to vector<1x512xf32>
    %24 = arith.mulf %16, %23 : vector<1x512xf32>
    %25 = vector.broadcast %0 : f32 to vector<1x512xf32>
    %26 = arith.mulf %22, %25 : vector<1x512xf32>
    %27 = arith.mulf %24, %24 : vector<1x512xf32>
    %28 = arith.subf %26, %27 : vector<1x512xf32>
    %cst_14 = arith.constant 0.00999999977 : f32
    %29 = vector.broadcast %cst_14 : f32 to vector<1x512xf32>
    %30 = arith.maximumf %28, %29 : vector<1x512xf32>
    %31 = math.rsqrt %30 : vector<1x512xf32>
    %32 = vector.broadcast %24 : vector<1x512xf32> to vector<8x512xf32>
    %33 = arith.subf %1, %32 : vector<8x512xf32>
    %34 = vector.broadcast %31 : vector<1x512xf32> to vector<8x512xf32>
    %35 = arith.mulf %33, %34 : vector<8x512xf32>
    %c0_15 = arith.constant 0 : index
    %c0_16 = arith.constant 0 : index
    %36 = vector.load %arg5[%c0_15, %c0_16] : memref<8x512xf32, #tpu.memory_space<vmem>>, vector<8x512xf32>
    tpu.vector_store %arg5[%c0_15, %c0_16], %35 {strides = array<i32>} : memref<8x512xf32, #tpu.memory_space<vmem>>, vector<8x512xf32>,
    %c0_17 = arith.constant 0 : index
    %c0_18 = arith.constant 0 : index
    %37 = vector.load %arg6[%c0_17, %c0_18] : memref<1x512xf32, #tpu.memory_space<vmem>>, vector<1x512xf32>
    tpu.vector_store %arg6[%c0_17, %c0_18], %16 {strides = array<i32>} : memref<1x512xf32, #tpu.memory_space<vmem>>, vector<1x512xf32>,
    %c0_19 = arith.constant 0 : index
    %c0_20 = arith.constant 0 : index
    %38 = vector.load %arg7[%c0_19, %c0_20] : memref<1x512xf32, #tpu.memory_space<vmem>>, vector<1x512xf32>
    tpu.vector_store %arg7[%c0_19, %c0_20], %22 {strides = array<i32>} : memref<1x512xf32, #tpu.memory_space<vmem>>, vector<1x512xf32>,
    return
  }
  func.func @transform_0(%arg0: i32) -> (i32, i32) {
    %c0_i32 = arith.constant 0 : i32
    %c0_i32_0 = arith.constant 0 : i32
    %c0_i32_1 = arith.constant 0 : i32
    return %c0_i32, %c0_i32_0 : i32, i32
  }
  func.func @transform_1(%arg0: i32) -> (i32, i32) {
    %c0_i32 = arith.constant 0 : i32
    %c0_i32_0 = arith.constant 0 : i32
    return %c0_i32, %arg0 : i32, i32
  }
  func.func @transform_2(%arg0: i32) -> (i32, i32) {
    %c0_i32 = arith.constant 0 : i32
    %c0_i32_0 = arith.constant 0 : i32
    return %c0_i32, %arg0 : i32, i32
  }
  func.func @transform_3(%arg0: i32) -> (i32, i32) {
    %c0_i32 = arith.constant 0 : i32
    %c0_i32_0 = arith.constant 0 : i32
    return %c0_i32, %arg0 : i32, i32
  }
  func.func @transform_4(%arg0: i32) -> (i32, i32) {
    %c0_i32 = arith.constant 0 : i32
    %c0_i32_0 = arith.constant 0 : i32
    return %c0_i32, %arg0 : i32, i32
  }
  func.func @transform_5(%arg0: i32) -> (i32, i32) {
    %c0_i32 = arith.constant 0 : i32
    %c0_i32_0 = arith.constant 0 : i32
    return %c0_i32, %arg0 : i32, i32
  }
  func.func @transform_6(%arg0: i32) -> (i32, i32) {
    %c0_i32 = arith.constant 0 : i32
    %c0_i32_0 = arith.constant 0 : i32
    return %c0_i32, %arg0 : i32, i32
  }
}

</mosaic_0001>

<bundles_post_ra>
// kernel: normalize_ewma_train.1
= control target key start
LH: loop header
LB: loop body
LE: loop exit
PB: predicated region body
PF: predicated region fallthrough
CT: control target
= control target key end

     0   :  { %s1345_s0 = inlined_call_operand.<no memory space> [shape: f32[1,1], index: 0, kind: input, shape index: {}]   ;;  %s1346_s1 = inlined_call_operand.hbm [shape: f32[8,1024], index: 1, kind: input, shape index: {}]   ;;  %s1347_s2 = inlined_call_operand.vmem [shape: f32[1,1024], index: 2, kind: input, shape index: {}]   ;;  %s1348_s3 = inlined_call_operand.vmem [shape: f32[1,1024], index: 3, kind: input, shape index: {}]   ;;  %s1349_s4 = inlined_call_operand.hbm [shape: f32[8,1024], index: 4, kind: output, shape index: {0}]   ;;  %s1350_s5 = inlined_call_operand.hbm [shape: f32[1,1024], index: 5, kind: output, shape index: {1}]   ;;  %s1351_s6 = inlined_call_operand.hbm [shape: f32[1,1024], index: 6, kind: output, shape index: {2}]  }
   0x1   :  { %12 = sst [smem:[#allocation2]] %s1345_s0 }
   0x2   :  { %13 = vsyncpa [#allocation4], 0 }
   0x3   :  { %15 = vsyncpa [#allocation4 + $0x1], 0 }
   0x4   :  { %16 = vsyncpa [#allocation5], 0 }
   0x5   :  { %18 = vsyncpa [#allocation5 + $0x1], 0 }
   0x6   :  { %19 = vsyncpa [#allocation8], 0 }
   0x7   :  { %21 = vsyncpa [#allocation8 + $0x1], 0  ;;  %s1023_s23 = smov 0   ;;  %s1025_s24 = smov 0  }
   0x8   :  { %s1027_s25 = smov 0   ;;  %s1029_s26 = smov 0  }
   0x9 LB: > { %s1044_s0 = sadd.s32 4294967295, %s978_s26   ;;  %s1353_s27 = sadd.s32 4294967294, %s978_s26   ;;  %s978_s26 = sphi %s1029_s26, %s1373_s26   ;;  %s974_s25 = sphi %s1027_s25, %s1372_s25   ;;  %s970_s24 = sphi %s1025_s24, %s1371_s24   ;;  %s966_s23 = sphi %s1023_s23, %s1370_s23  }
   0xa   : > { %s1048_s28 = sadd.s32 1, %s978_s26   ;;  %s55_s29 = sadd.s32 1, %s974_s25 }
   0xb   : > { %s52_s30 = ssub.s32 %s978_s26, %s1048_s28  ;;  %p62_p0 = scmp.ne.s32.totalorder %s974_s25, %s970_s24 }
   0xc   : > { %p53_p1 = scmp.eq.s32.totalorder %s52_s30, 0  ;;  %p63_p2 = scmp.eq.s32.totalorder %s978_s26, 0 }
   0xd   : > { %p68_p3 = scmp.ne.s32.totalorder %s970_s24, %s966_s23  ;;  %p69_p4 = scmp.eq.s32.totalorder %s1044_s0, 0 }
   0xe   : > { %s1060_s7 = scalar_select %p53_p1, %s974_s25, %s55_s29  }
   0xf   : > { %p1062_p5 = por %p63_p2, %p62_p0  ;;  %p1066_p6 = por %p69_p4, %p68_p3 }
  0x10   : > { %p144_p7 = scmp.eq.s32.totalorder %s1044_s0, 1  ;;  %p150_p8 = scmp.eq.s32.totalorder %s1353_s27, 1 }
  0x11   : > { %p785_p10 = scmp.lt.s32.totalorder %s978_s26, 2  ;;  %s225_s12 = sand.u32 1, %s974_s25  }
  0x12   : > { %p1075_p11 = por %p144_p7, %p62_p0  ;;  %p1079_p12 = por %p150_p8, %p68_p3 }
  0x13   : > { %s759_s13 = sshll.u32 %s978_s26, 9  ;;  %s738_s14 = sshll.u32 %s225_s12, 5 }
  0x14   : > { %s1357_s10 = scalar_select %p1075_p11, 1, 0 }
  0x15   : > { %s1358_s11 = scalar_select %p1079_p12, 1, 0 }
  0x16   : > { %s1088_s17 = scalar_lea.hbm %s1346_s1, %s759_s13  ;;  %s229_s18 = scalar_lea.vmem [#allocation3], %s738_s14 }
  0x17   : > { %s237_s19 = sshll.u32 %s229_s18, 4  ;;  %p1092_p13 = pnand %p785_p10, %p1062_p5  ;;  %s1096_s19 = int_to_ptr.vmem [resolvable:$true] %s237_s19 }
  0x18   : > { %s226_s21 = scalar_lea.sflag [#allocation4], %s225_s12  ;;  %s822_s22 = scalar_lea.hbm %s1088_s17, 512 }
  0x19   : > { %p823_p2 = scmp.ne.s32.totalorder %s1088_s17, %s822_s22  ;;  %p824_p3 = pneg %p1092_p13 }
  0x1a   : > { %s827_s8 = scalar_lea.hbm %s1346_s1, 1024  ;;  %p828_p5 = scmp.lt.u32.totalorder %s1088_s17, %s1346_s1 }
  0x1b   : > { %p825_p4 = pnand %p824_p3, %p823_p2  ;;  %p829_p8 = scmp.lt.u32.totalorder %s827_s8, %s822_s22 }
  0x1c   : > { %p831_p9 = scmp.lt.u32.totalorder %s822_s22, %s1088_s17 }
  0x1d   : > { %p826_p7 = pneg %p825_p4  ;;  %p830_p10 = por %p829_p8, %p828_p5 }
  0x1f   : > { %p832_p0 = por %p831_p9, %p830_p10 }
  0x21   : > { %p833_p1 = pnand %p832_p0, %p826_p7 }
  0x23   : > { %836 = shalt.err (!%p833_p1)
}
  0x24   : > { %s837_s12 = scalar_lea.vmem %s1096_s19, 512  ;;  %s980_s15 = smov [#allocation3]  }
  0x25   : > { %p838_p2 = scmp.ne.s32.totalorder %s1096_s19, %s837_s12  ;;  %s842_s16 = sshll.u32 %s980_s15, 4  ;;  %s843_s16 = int_to_ptr.vmem [resolvable:$false] %s842_s16 }
  0x26   : > { %s844_s18 = scalar_lea.vmem %s843_s16, 1024  ;;  %p845_p11 = scmp.lt.s32.totalorder %s1096_s19, %s843_s16 }
  0x27   : > { %p840_p4 = pnand %p838_p2, %p824_p3  ;;  %p846_p5 = scmp.lt.s32.totalorder %s844_s18, %s837_s12 }
  0x29   : > { %p841_p12 = pneg %p840_p4  ;;  %p847_p8 = por %p846_p5, %p845_p11 }
  0x2b   : > { %p848_p9 = pnand %p847_p8, %p841_p12 }
  0x2d   : > { %851 = shalt.err (!%p848_p9)
}
  0x2e   : > { %774 = dma.hbm_to_vmem [thread:$0]  (!%p1092_p13), %s1088_s17, 512, %s1096_s19, %s226_s21  }
  0x2f   : > { %p1360_p0 = scmp.lt.s32.totalorder %s978_s26, 3  ;;  %p1361_p1 = scmp.ge.s32.totalorder %s978_s26, 1 }
  0x31   : > { %p259_p3 = pnand %p1361_p1, %p1360_p0 }
  0x32   : > { %s1130_s22 = sand.u32 (!%p259_p3), 1, %s970_s24  }
  0x33   : > { %262 = sbr.rel (%p259_p3) target bundleno = 157 (0x9d), region = 36  ;;  %s1354_s29 = sshll.u32 (!%p259_p3), %s1130_s22, 5 }
  0x34   : > { %s265_s30 = scalar_lea.sflag (!%p259_p3), [#allocation4], %s1130_s22  ;;  %s268_s20 = scalar_lea.vmem (!%p259_p3), [#allocation3], %s1354_s29 }
  0x3a   : > { %953 = dma.done.wait (%p1066_p6), %s265_s30, 512  }
  0x3b   : > { %955 = vsyncadd (%p1066_p6), %s265_s30, 4294966784  ;;  %v981_v0 = vmov 1966171168   ;;  %v409_v2 = vlaneseq  ;;  %v1142_v3 = vld [vmem:[%s268_s20] sm:$0xff]  ;;  %v1144_v4 = vld [vmem:[%s268_s20 + $0x8] sm:$0xff]  ;;  %s746_s9 = sshll.u32 %s1044_s0, 2 }
  0x3c   : > { %v1140_v1 = vunpack.c.l.s4 %v981_v0  ;;  %v1146_v5 = vld [vmem:[%s268_s20 + $0x10] sm:$0xff]  ;;  %v1152_v8 = vld [vmem:[%s268_s20 + $0x18] sm:$0xff]  ;;  %v334_v9 = vrot.slane %v1142_v3, 4  ;;  %v340_v10 = vrot.slane %v1144_v4, 4  ;;  %v362_v12 = vmul.f32 %v1142_v3, %v1142_v3  ;;  %p1173_p6 = scmp.lt.s32.totalorder %s746_s9, 7  ;;  %s744_s19 = sshll.u32 %s1130_s22, 2 }
  0x3d   : > { %v1150_v7 = vshrl.u32 %v409_v2, 7  ;;  %v346_v11 = vrot.slane %v1146_v5, 4  ;;  %v352_v13 = vrot.slane %v1152_v8, 4  ;;  %v363_v14 = vmul.f32 %v1144_v4, %v1144_v4  ;;  %s1191_s14 = sld [smem:[#allocation2]]  ;;  %s307_s18 = scalar_lea.vmem [#allocation7], %s744_s19 }
  0x3e   : > { %v408_v6 = vunpack.c.0.s8 %v1140_v1  ;;  %v364_v15 = vmul.f32 %v1146_v5, %v1146_v5  ;;  %v365_v16 = vmul.f32 %v1152_v8, %v1152_v8  ;;  %v335_v17 = vadd.f32 %v334_v9, %v1142_v3  ;;  %s1375_s9 = smov (!%p1173_p6, %s746_s9), 7  ;;  %s572_s30 = sshll.u32 %s307_s18, 4  ;;  %s1207_s30 = int_to_ptr.vmem [resolvable:$true] %s572_s30 }
  0x3f   : > { %v341_v18 = vadd.f32 %v340_v10, %v1144_v4  ;;  %v347_v19 = vadd.f32 %v346_v11, %v1146_v5  ;;  %v366_v20 = vrot.slane %v362_v12, 4  ;;  %v353_v21 = vadd.f32 %v352_v13, %v1152_v8  ;;  %s319_s13 = scalar_lea.vmem %s1347_s2, %s1375_s9  ;;  %s324_s16 = scalar_lea.vmem %s1348_s3, %s1375_s9 }
  0x40   : > { %v372_v22 = vrot.slane %v363_v14, 4  ;;  %v378_v23 = vrot.slane %v364_v15, 4  ;;  %v384_v24 = vrot.slane %v365_v16, 4  ;;  %v336_v25 = vrot.slane %v335_v17, 2  ;;  %s538_s20 = sand.u32 1, %s1044_s0   ;;  %s761_s9 = sshll.u32 %s1044_s0, 6 }
  0x41   : > { %v342_v26 = vrot.slane %v341_v18, 2  ;;  %v348_v27 = vrot.slane %v347_v19, 2  ;;  %v367_v28 = vadd.f32 %v366_v20, %v362_v12  ;;  %v354_v29 = vrot.slane %v353_v21, 2  ;;  %s1211_s17 = scalar_lea.vmem [#allocation9], %s744_s19  ;;  %s1228_s15 = scalar_lea.hbm %s1351_s6, %s761_s9 }
  0x42   : > { %v373_v30 = vadd.f32 %v372_v22, %v363_v14  ;;  %v379_v31 = vadd.f32 %v378_v23, %v364_v15  ;;  %v385_v32 = vadd.f32 %v384_v24, %v365_v16  ;;  %v337_v33 = vadd.f32 %v336_v25, %v335_v17  ;;  %v394_v22 = vld [vmem:[%s319_s13] sm:$0xf]  ;;  %s586_s21 = sshll.u32 %s1211_s17, 4  ;;  %s852_s27 = scalar_lea.vmem %s1207_s30, 64  ;;  %s1223_s21 = int_to_ptr.vmem [resolvable:$true] %s586_s21 }
  0x43   : > { %v343_v34 = vadd.f32 %v342_v26, %v341_v18  ;;  %v349_v35 = vadd.f32 %v348_v27, %v347_v19  ;;  %v368_v36 = vrot.slane %v367_v28, 2  ;;  %v355_v37 = vadd.f32 %v354_v29, %v353_v21  ;;  %v430_v27 = vld [vmem:[%s324_s16] sm:$0xf]  ;;  %s1230_s16 = scalar_lea.sflag [#allocation8], %s538_s20  ;;  %p853_p11 = scmp.ne.s32.totalorder %s1207_s30, %s852_s27 }
  0x44   : > { %v374_v38 = vrot.slane %v373_v30, 2  ;;  %v380_v39 = vrot.slane %v379_v31, 2  ;;  %v386_v40 = vrot.slane %v385_v32, 2  ;;  %v338_v41 = vrot.slane %v337_v33, 1  ;;  %p1365_p12 = scmp.ne.s32.totalorder %s1357_s10, 0  ;;  %s982_s8 = smov [#allocation7]  }
  0x45   : > { %v344_v42 = vrot.slane %v343_v34, 1  ;;  %v350_v43 = vrot.slane %v349_v35, 1  ;;  %v369_v44 = vadd.f32 %v368_v36, %v367_v28  ;;  %v356_v45 = vrot.slane %v355_v37, 1  ;;  %s856_s13 = sshll.u32 %s982_s8, 4  ;;  %s857_s13 = int_to_ptr.vmem [resolvable:$false] %s856_s13 }
  0x46   : > { %v375_v46 = vadd.f32 %v374_v38, %v373_v30  ;;  %v381_v47 = vadd.f32 %v380_v39, %v379_v31  ;;  %v387_v48 = vadd.f32 %v386_v40, %v385_v32  ;;  %v339_v49 = vadd.f32 %v338_v41, %v337_v33  ;;  %p854_p13 = pnand %p853_p11, %p1365_p12  ;;  %s858_s29 = scalar_lea.vmem %s857_s13, 128 }
  0x47   : > { %v345_v50 = vadd.f32 %v344_v42, %v343_v34  ;;  %v351_v51 = vadd.f32 %v350_v43, %v349_v35  ;;  %v370_v52 = vrot.slane %v369_v44, 1  ;;  %v357_v53 = vadd.f32 %v356_v45, %v355_v37  ;;  %p859_p10 = scmp.lt.s32.totalorder %s1207_s30, %s857_s13  ;;  %p860_p2 = scmp.lt.s32.totalorder %s858_s29, %s852_s27 }
  0x48   : > { %v376_v54 = vrot.slane %v375_v46, 1  ;;  %v382_v55 = vrot.slane %v381_v47, 1  ;;  %v388_v56 = vrot.slane %v387_v48, 1  ;;  %v358_v57 = vmul.f32 0.125, %v339_v49  ;;  %p855_p7 = pneg %p854_p13 }
  0x49   : > { %v359_v58 = vmul.f32 0.125, %v345_v50  ;;  %v360_v59 = vmul.f32 0.125, %v351_v51  ;;  %v371_v60 = vadd.f32 %v370_v52, %v369_v44  ;;  %v361_v61 = vmul.f32 0.125, %v357_v53  ;;  %p861_p4 = por %p860_p2, %p859_p10 }
  0x4a   : > { %v377_v62 = vadd.f32 %v376_v54, %v375_v46  ;;  %v383_v63 = vadd.f32 %v382_v55, %v381_v47  ;;  %v389_v0 = vadd.f32 %v388_v56, %v387_v48  ;;  %v396_v10 = vmul.f32 0.01, %v358_v57 }
  0x4b   : > { %v390_v9 = vmul.f32 0.125, %v371_v60  ;;  %v411_v11 = vsub.s32 %v408_v6, %v1150_v7  ;;  %v397_v15 = vmul.f32 0.01, %v359_v58  ;;  %v398_v16 = vmul.f32 0.01, %v360_v59  ;;  %p862_p5 = pnand %p861_p4, %p855_p7 }
  0x4c   : > { %v391_v12 = vmul.f32 0.125, %v377_v62  ;;  %v392_v13 = vmul.f32 0.125, %v383_v63  ;;  %v393_v14 = vmul.f32 0.125, %v389_v0  ;;  %v399_v17 = vmul.f32 0.01, %v361_v61 }
  0x4d   : > { %v404_v18 = vcombine.low %v396_v10, %v397_v15  ;;  %v432_v19 = vmul.f32 0.01, %v390_v9  ;;  %v395_v29 = vmul.f32 0.99, %v394_v22  ;;  %v431_v33 = vmul.f32 0.99, %v430_v27 }
  0x4e   : > { %v433_v20 = vmul.f32 0.01, %v391_v12  ;;  %v434_v21 = vmul.f32 0.01, %v392_v13  ;;  %v405_v1 = vcombine.low %v398_v16, %v399_v17  ;;  %v435_v6 = vmul.f32 0.01, %v393_v14 }
  0x4f   : > { %v412_v23 = vrot.slane %v404_v18, %v411_v11  ;;  %v466_v35 = vstv %s1191_s14  ;;  %vm1203_vm0 = vcmp.lt.s32.totalorder %v409_v2, 512  ;;  %s1217_s14 = scalar_lea.hbm %s1350_s5, %s761_s9 }
  0x50   : > { %v440_v24 = vcombine.low %v432_v19, %v433_v20  ;;  %v419_v25 = vrot.slane %v405_v1, %v411_v11  ;;  %v441_v26 = vcombine.low %v434_v21, %v435_v6 }
  0x52   : > { %v448_v28 = vrot.slane %v440_v24, %v411_v11  ;;  %v420_v30 = vcombine.low %v412_v23, %v419_v25  ;;  %v455_v31 = vrot.slane %v441_v26, %v411_v11 }
  0x54   : > { %v427_v32 = vrot.slane %v420_v30, %v411_v11  ;;  %v456_v34 = vcombine.low %v448_v28, %v455_v31 }
  0x56   : > { %v429_v37 = vadd.f32 %v427_v32, %v395_v29  ;;  %v463_v38 = vrot.slane %v456_v34, %v411_v11 }
  0x58   : > { %v465_v2 = vadd.f32 %v463_v38, %v431_v33  ;;  %v1219_v39 = vmul.f32 %v466_v35, %v429_v37  ;;  %531 = vst.msk [vmem:[%s307_s18] sm:$0xf] %vm1203_vm0, %v429_v37 }
  0x59   : > { %865 = shalt.err (!%p862_p5)
}
  0x5a   : > { %s866_s18 = scalar_lea.hbm %s1217_s14, 64  ;;  %s870_s19 = scalar_lea.hbm %s1350_s5, 128 }
  0x5b   : > { %p867_p8 = scmp.ne.s32.totalorder %s1217_s14, %s866_s18  ;;  %p871_p1 = scmp.lt.u32.totalorder %s1217_s14, %s1350_s5 }
  0x5c   : > { %p872_p3 = scmp.lt.u32.totalorder %s870_s19, %s866_s18  ;;  %p874_p11 = scmp.lt.u32.totalorder %s866_s18, %s1217_s14 }
  0x5d   : > { %p868_p9 = pnand %p867_p8, %p1365_p12 }
  0x5e   : > { %p873_p6 = por %p872_p3, %p871_p1 }
  0x5f   : > { %p869_p0 = pneg %p868_p9 }
  0x60   : > { %p875_p13 = por %p874_p11, %p873_p6 }
  0x62   : > { %p876_p7 = pnand %p875_p13, %p869_p0 }
  0x64   : > { %879 = shalt.err (!%p876_p7)
}
  0x65   : > { %766 = dma.vmem_to_hbm [thread:$0]  (%p1365_p12), %s1207_s30, 64, %s1217_s14, %s1230_s16   ;;  %v468_v40 = vmul.f32 %v466_v35, %v465_v2  ;;  %v469_v41 = vmul.f32 %v1219_v39, %v1219_v39  ;;  %532 = vst.msk [vmem:[%s1211_s17] sm:$0xf] %vm1203_vm0, %v465_v2 }
  0x66   : > { %s880_s27 = scalar_lea.vmem %s1223_s21, 64  ;;  %s983_s29 = smov [#allocation9]  }
  0x67   : > { %p881_p10 = scmp.ne.s32.totalorder %s1223_s21, %s880_s27  ;;  %s884_s13 = sshll.u32 %s983_s29, 4  ;;  %s885_s13 = int_to_ptr.vmem [resolvable:$false] %s884_s13 }
  0x68   : > { %s886_s18 = scalar_lea.vmem %s885_s13, 128  ;;  %p887_p5 = scmp.lt.s32.totalorder %s1223_s21, %s885_s13 }
  0x69   : > { %p882_p2 = pnand %p881_p10, %p1365_p12  ;;  %p888_p8 = scmp.lt.s32.totalorder %s886_s18, %s880_s27 }
  0x6b   : > { %p883_p4 = pneg %p882_p2  ;;  %p889_p9 = por %p888_p8, %p887_p5 }
  0x6d   : > { %p890_p0 = pnand %p889_p9, %p883_p4 }
  0x6f   : > { %893 = shalt.err (!%p890_p0)
}
  0x70   : > { %s894_s30 = scalar_lea.hbm %s1228_s15, 64  ;;  %s898_s20 = scalar_lea.hbm %s1351_s6, 128 }
  0x71   : > { %p895_p1 = scmp.ne.s32.totalorder %s1228_s15, %s894_s30  ;;  %p899_p11 = scmp.lt.u32.totalorder %s1228_s15, %s1351_s6 }
  0x72   : > { %p900_p13 = scmp.lt.u32.totalorder %s898_s20, %s894_s30  ;;  %p902_p10 = scmp.lt.u32.totalorder %s894_s30, %s1228_s15 }
  0x73   : > { %p896_p3 = pnand %p895_p1, %p1365_p12 }
  0x74   : > { %p901_p7 = por %p900_p13, %p899_p11 }
  0x75   : > { %p897_p6 = pneg %p896_p3 }
  0x76   : > { %p903_p2 = por %p902_p10, %p901_p7 }
  0x78   : > { %p904_p4 = pnand %p903_p2, %p897_p6 }
  0x7a   : > { %907 = shalt.err (!%p904_p4)
}
  0x7b   : > { %767 = dma.vmem_to_hbm [thread:$0]  (%p1365_p12), %s1223_s21, 64, %s1228_s15, %s1230_s16   ;;  %v470_v42 = vsub.f32 %v468_v40, %v469_v41  ;;  %v476_v44 = vsub.s32 0, %v1150_v7  ;;  %v480_v45 = vsub.s32 1, %v1150_v7  ;;  %v484_v46 = vsub.s32 2, %v1150_v7 }
  0x7c   : > { %v488_v47 = vsub.s32 3, %v1150_v7  ;;  %s1366_s21 = sshll.u32 %s1130_s22, 5  ;;  %s760_s12 = sshll.u32 %s1044_s0, 9 }
  0x7d   : > { %v471_v43 = vmax.f32 %v470_v42, 0.01  ;;  %v477_v48 = vrot.slane %v1219_v39, %v476_v44  ;;  %v481_v49 = vrot.slane %v1219_v39, %v480_v45  ;;  %v485_v50 = vrot.slane %v1219_v39, %v484_v46  ;;  %s300_s15 = scalar_lea.vmem [#allocation6], %s1366_s21  ;;  %s1301_s29 = scalar_lea.hbm %s1349_s4, %s760_s12 }
  0x7e   : > { %v489_v51 = vrot.slane %v1219_v39, %v488_v47  ;;  %s558_s16 = sshll.u32 %s300_s15, 4  ;;  %s534_s0 = scalar_lea.sflag [#allocation5], %s1130_s22  ;;  %s1296_s16 = int_to_ptr.vmem [resolvable:$true] %s558_s16 }
  0x7f   : > { %820 = vrsqrt.f32 %v471_v43  ;;  %v494_v52 = vsub.f32 %v1142_v3, %v477_v48  ;;  %v495_v53 = vsub.f32 %v1144_v4, %v481_v49  ;;  %v496_v54 = vsub.f32 %v1146_v5, %v485_v50  ;;  %s908_s13 = scalar_lea.vmem %s1296_s16, 512  ;;  %s984_s18 = smov [#allocation6]  }
  0x80   : > { %v497_v55 = vsub.f32 %v1152_v8, %v489_v51  ;;  %p909_p5 = scmp.ne.s32.totalorder %s1296_s16, %s908_s13  ;;  %s912_s30 = sshll.u32 %s984_s18, 4  ;;  %s913_s30 = int_to_ptr.vmem [resolvable:$false] %s912_s30 }
  0x81   : > { %s914_s17 = scalar_lea.vmem %s913_s30, 1024  ;;  %p915_p0 = scmp.lt.s32.totalorder %s1296_s16, %s913_s30 }
  0x82   : > { %p910_p8 = pnand %p909_p5, %p1365_p12  ;;  %p916_p1 = scmp.lt.s32.totalorder %s914_s17, %s908_s13 }
  0x84   : > { %p911_p9 = pneg %p910_p8  ;;  %p917_p3 = por %p916_p1, %p915_p0 }
  0x86   : > { %p918_p6 = pnand %p917_p3, %p911_p9 }
  0x89   : > { %v821_v7 = vpop.eup %820 }
  0x8a   : > { %v502_v56 = vrot.slane %v821_v7, %v476_v44  ;;  %v506_v57 = vrot.slane %v821_v7, %v480_v45  ;;  %v510_v58 = vrot.slane %v821_v7, %v484_v46  ;;  %v514_v59 = vrot.slane %v821_v7, %v488_v47 }
  0x8c   : > { %v519_v3 = vmul.f32 %v502_v56, %v494_v52  ;;  %v520_v60 = vmul.f32 %v506_v57, %v495_v53  ;;  %v521_v61 = vmul.f32 %v510_v58, %v496_v54  ;;  %v522_v4 = vmul.f32 %v514_v59, %v497_v55 }
  0x8e   : > { %523 = vst [vmem:[%s300_s15] sm:$0xff] %v519_v3  ;;  %524 = vst [vmem:[%s300_s15 + $0x8] sm:$0xff] %v520_v60 }
  0x8f   : > { %525 = vst [vmem:[%s300_s15 + $0x10] sm:$0xff] %v521_v61  ;;  %526 = vst [vmem:[%s300_s15 + $0x18] sm:$0xff] %v522_v4 }
  0x90   : > { %921 = shalt.err (!%p918_p6)
}
  0x91   : > { %s922_s22 = scalar_lea.hbm %s1301_s29, 512  ;;  %s926_s9 = scalar_lea.hbm %s1349_s4, 1024 }
  0x92   : > { %p923_p11 = scmp.ne.s32.totalorder %s1301_s29, %s922_s22  ;;  %p927_p10 = scmp.lt.u32.totalorder %s1301_s29, %s1349_s4 }
  0x93   : > { %p928_p2 = scmp.lt.u32.totalorder %s926_s9, %s922_s22  ;;  %p930_p5 = scmp.lt.u32.totalorder %s922_s22, %s1301_s29 }
  0x94   : > { %p924_p13 = pnand %p923_p11, %p1365_p12 }
  0x95   : > { %p929_p4 = por %p928_p2, %p927_p10 }
  0x96   : > { %p925_p7 = pneg %p924_p13 }
  0x97   : > { %p931_p8 = por %p930_p5, %p929_p4 }
  0x99   : > { %p932_p9 = pnand %p931_p8, %p925_p7 }
  0x9b   : > { %935 = shalt.err (!%p932_p9)
}
  0x9c   : > { %765 = dma.vmem_to_hbm [thread:$0]  (%p1365_p12), %s1296_s16, 512, %s1301_s29, %s534_s0  }
  0x9d PF: > { %s598_s15 = sand.u32 1, %s966_s23   ;;  %p1367_p0 = scmp.ne.s32.totalorder %s1358_s11, 0 }
  0x9e   : > { %p1368_p1 = scmp.ge.s32.totalorder %s978_s26, 2  ;;  %s599_s12 = scalar_lea.sflag [#allocation5], %s598_s15 }
  0xa0   : > { %p776_p3 = pnand %p1368_p1, %p1367_p0 }
  0xa2   : > { %957 = dma.done.wait (!%p776_p3), %s599_s12, 512  }
  0xa3   : > { %959 = vsyncadd (!%p776_p3), %s599_s12, 4294966784  ;;  %s1369_s8 = sadd.s32 4294967294, %s978_s26  }
  0xa4   : > { %s607_s27 = sand.u32 1, %s1369_s8  }
  0xa5   : > { %s608_s13 = scalar_lea.sflag [#allocation8], %s607_s27 }
  0xa6   : > { %961 = dma.done.wait (!%p776_p3), %s608_s13, 128  }
  0xa7   : > { %963 = vsyncadd (!%p776_p3), %s608_s13, 4294967168  ;;  %p24_p12 = scmp.ge.s32.totalorder %s1048_s28, 4   ;;  %s1370_s23 = smov %s970_s24 }
  0xa8   : > { %s1371_s24 = smov %s974_s25  ;;  %s1372_s25 = smov %s1060_s7 }
  0xa9   : > { %s1373_s26 = smov %s1048_s28  ;;  %26 = sbr.rel (!%p24_p12) target bundleno = 9 (0x9), region = 119 }
  0xb0   :  { %622 = vsyncpa [#allocation4], 1 }
  0xb1   :  { %624 = vsyncpa [#allocation4 + $0x1], 1 }
  0xb2   :  { %625 = vsyncpa [#allocation5], 1 }
  0xb3   :  { %627 = vsyncpa [#allocation5 + $0x1], 1 }
  0xb4   :  { %628 = vsyncpa [#allocation8], 1 }
  0xb5   :  { %630 = vsyncpa [#allocation8 + $0x1], 1 }

</bundles_post_ra>
